<compile_context>
chip_gen: v7x
topology: tpu7x:2x2x1
jax: 0.10.0
libtpu: 0.0.40
codegen_flags: <defaults>
</compile_context>

<pallas_src>
import functools

import jax
import jax.numpy as jnp
from jax.experimental import pallas as pl
from jax.experimental.pallas import tpu as pltpu


def _ce_kernel(x_ref, t_ref, sum_ref, cnt_ref, *,
               ignore_index, hw, t_pix, targets_are_probs):
    """Per-block softmax cross entropy; emits per-block partial (sum, count).

    x_ref:   (1, C, T) logits block (classes on sublanes, pixels on lanes)
    t_ref:   (1, 1, T) int labels block  OR  (1, C, T) prob/one-hot block
    sum_ref: (1, 1, 8, 128) partial loss-sum tile (value at [0,0,0,0], zeros elsewhere)
    cnt_ref: (1, 1, 8, 128) partial valid-pixel-count tile
    """
    i = pl.program_id(1)                                   # pixel-block index

    x = x_ref[0].astype(jnp.float32)                       # (C, T)
    num_classes = x.shape[0]

    if targets_are_probs:
        # Fused torch.argmax(targets.float(), dim=1): first index achieving the max.
        tp = t_ref[0].astype(jnp.float32)                  # (C, T)
        row_t = jax.lax.broadcasted_iota(jnp.int32, tp.shape, 0)
        tmax = jnp.max(tp, axis=0, keepdims=True)          # (1, T)
        t = jnp.min(jnp.where(tp == tmax, row_t, num_classes),
                    axis=0, keepdims=True)                 # (1, T) int32
    else:
        t = t_ref[0].astype(jnp.int32)                     # (1, T)

    # Numerically-stable log-sum-exp over the class (sublane) axis.
    m = jnp.max(x, axis=0, keepdims=True)                                   # (1, T)
    lse = jnp.log(jnp.sum(jnp.exp(x - m), axis=0, keepdims=True)) + m       # (1, T)

    # Gather the target logit via a one-hot select over the class axis.
    row = jax.lax.broadcasted_iota(jnp.int32, x.shape, 0)                   # (C, T)
    tgt_logit = jnp.sum(jnp.where(row == t, x, 0.0), axis=0, keepdims=True) # (1, T)

    # Valid = not ignore_index AND inside the un-padded pixel range (ragged last block).
    pix = i * t_pix + jax.lax.broadcasted_iota(jnp.int32, (1, x.shape[1]), 1)
    valid = (t != ignore_index) & (pix < hw)                                # (1, T)

    per_px = jnp.where(valid, lse - tgt_logit, 0.0)                         # (1, T)
    s = jnp.sum(per_px)
    c = jnp.sum(valid.astype(jnp.float32))

    # Write the two scalars into element [0, 0] of an (8, 128) output tile.
    sub = jax.lax.broadcasted_iota(jnp.int32, (1, 1, 8, 128), 2)
    lane = jax.lax.broadcasted_iota(jnp.int32, (1, 1, 8, 128), 3)
    at0 = (sub == 0) & (lane == 0)
    sum_ref[...] = jnp.where(at0, s, 0.0)
    cnt_ref[...] = jnp.where(at0, c, 0.0)


def _pick_tile(hw, c, itemsize, target_bytes):
    """Pixels per block: multiple of 128 (last block may be ragged), or all of hw."""
    t = (target_bytes // max(c * itemsize, 1)) // 128 * 128
    t = max(t, 128)
    if t >= hw:
        return hw          # single block covering the whole spatial extent
    return int(t)


def cross_entropy_loss_2d(inputs, targets, ignore_index=255,
                          target_block_bytes=2 << 20):
    """JAX/Pallas equivalent of CrossEntropyLoss2d.forward(inputs, targets).

    inputs:  (N, C, H, W) logits (f32 or bf16).
    targets: (N, H, W) int labels, or (N, C, H, W) one-hot / probability maps.
    Returns the mean loss over pixels whose label != ignore_index.
    (NaN if every pixel is ignored -- matches torch's 'mean' semantics.)
    """
    N, C, H, W = inputs.shape
    HW = H * W
    x = inputs.reshape(N, C, HW)                       # free reshape, no HBM copy

    targets_are_probs = targets.ndim > 3
    if targets_are_probs:
        t = targets.reshape(N, C, HW)                  # argmax fused in-kernel
    else:
        t = targets.reshape(N, 1, HW).astype(jnp.int32)

    T = _pick_tile(HW, C, inputs.dtype.itemsize, target_block_bytes)
    nblk = int(pl.cdiv(HW, T))
    grid = (N, nblk)

    if targets_are_probs:
        t_spec = pl.BlockSpec((1, C, T), lambda n, i: (n, 0, i))
    else:
        t_spec = pl.BlockSpec((1, 1, T), lambda n, i: (n, 0, i))

    kernel = functools.partial(
        _ce_kernel, ignore_index=ignore_index, hw=HW, t_pix=T,
        targets_are_probs=targets_are_probs)

    cost = pl.CostEstimate(
        flops=6 * N * C * HW,
        transcendentals=N * C * HW,
        bytes_accessed=int(x.size * x.dtype.itemsize + t.size * t.dtype.itemsize
                           + 2 * N * nblk * 8 * 128 * 4),
    )

    sums, cnts = pl.pallas_call(
        kernel,
        out_shape=(jax.ShapeDtypeStruct((N, nblk, 8, 128), jnp.float32),
                   jax.ShapeDtypeStruct((N, nblk, 8, 128), jnp.float32)),
        grid_spec=pltpu.PrefetchScalarGridSpec(
            num_scalar_prefetch=0,
            grid=grid,
            in_specs=[pl.BlockSpec((1, C, T), lambda n, i: (n, 0, i)),
                      t_spec],
            out_specs=[pl.BlockSpec((1, 1, 8, 128), lambda n, i: (n, i, 0, 0)),
                       pl.BlockSpec((1, 1, 8, 128), lambda n, i: (n, i, 0, 0))],
        ),
        compiler_params=pltpu.CompilerParams(
            dimension_semantics=("parallel", "parallel")),
        cost_estimate=cost,
    )(x, t)

    # Tiny final reduction in plain JAX (also fixes long sequential f32 accumulation).
    return jnp.sum(sums) / jnp.sum(cnts)


def _reference_loss(inputs, targets, ignore_index=255):
    """Pure-JAX reference (mirrors torch.nn.CrossEntropyLoss, weight=None, mean)."""
    if targets.ndim > 3:
        targets = jnp.argmax(targets.astype(jnp.float32), axis=1)
    logp = jax.nn.log_softmax(inputs.astype(jnp.float32), axis=1)   # (N, C, H, W)
    t = targets.astype(jnp.int32)
    valid = t != ignore_index
    t_safe = jnp.where(valid, t, 0)
    picked = jnp.take_along_axis(logp, t_safe[:, None, :, :], axis=1)[:, 0]
    losses = jnp.where(valid, -picked, 0.0)
    return jnp.sum(losses) / jnp.sum(valid.astype(jnp.float32))


if __name__ == "__main__":
    key = jax.random.PRNGKey(0)
    k1, k2, k3, k4 = jax.random.split(key, 4)

    # --- primary shapes: N=2, C=4, H=W=16 ---
    N, C, H, W = 2, 4, 16, 16
    logits = jax.random.normal(k1, (N, C, H, W), dtype=jnp.float32)

    # 3-D integer-label path, with some pixels set to ignore_index=255
    labels = jax.random.randint(k2, (N, H, W), 0, C, dtype=jnp.int32)
    ignore_mask = jax.random.uniform(k3, (N, H, W)) < 0.1
    labels = jnp.where(ignore_mask, 255, labels)

    loss_labels = cross_entropy_loss_2d(logits, labels)
    jax.block_until_ready(loss_labels)
    ref_labels = _reference_loss(logits, labels)
    assert jnp.allclose(loss_labels, ref_labels, atol=1e-4, rtol=1e-4), (
        loss_labels, ref_labels)

    # 4-D one-hot target path (exercises the fused in-kernel argmax branch)
    onehot_targets = jax.nn.one_hot(
        jax.random.randint(k2, (N, H, W), 0, C), C, axis=1, dtype=jnp.float32)
    loss_onehot = cross_entropy_loss_2d(logits, onehot_targets)
    jax.block_until_ready(loss_onehot)
    ref_onehot = _reference_loss(logits, onehot_targets)
    assert jnp.allclose(loss_onehot, ref_onehot, atol=1e-4, rtol=1e-4), (
        loss_onehot, ref_onehot)

    # Ragged-tail path: H*W not a multiple of the pixel tile (force a tiny tile budget)
    H2, W2 = 24, 24
    logits2 = jax.random.normal(k4, (N, C, H2, W2), dtype=jnp.float32)
    labels2 = jax.random.randint(k2, (N, H2, W2), 0, C, dtype=jnp.int32)
    labels2 = jnp.where(jax.random.uniform(k3, (N, H2, W2)) < 0.1, 255, labels2)
    loss_ragged = cross_entropy_loss_2d(logits2, labels2, target_block_bytes=4096)
    jax.block_until_ready(loss_ragged)
    ref_ragged = _reference_loss(logits2, labels2)
    assert jnp.allclose(loss_ragged, ref_ragged, atol=1e-4, rtol=1e-4), (
        loss_ragged, ref_ragged)

    print("KERNEL_OK")
</pallas_src>

<mosaic_0001>
module attributes {stable_mosaic.version = 11 : i64} {
  func.func @_ce_kernel(%arg0: i32, %arg1: i32, %arg2: memref<1x4x256xf32, #tpu.memory_space<vmem>>, %arg3: memref<1x1x256xi32, #tpu.memory_space<vmem>>, %arg4: memref<1x1x8x128xf32, #tpu.memory_space<vmem>>, %arg5: memref<1x1x8x128xf32, #tpu.memory_space<vmem>>) attributes {dimension_semantics = [#tpu.dimension_semantics<parallel>, #tpu.dimension_semantics<parallel>], iteration_bounds = array<i64: 2, 1>, scalar_prefetch = 0 : i64, scratch_operands = 0 : i64, tpu.core_type = #tpu.core_type<tc>, window_params = [{transform_indices = @transform_0, window_bounds = array<i64: 1, 4, 256>}, {transform_indices = @transform_1, window_bounds = array<i64: 1, 1, 256>}, {transform_indices = @transform_2, window_bounds = array<i64: 1, 1, 8, 128>}, {transform_indices = @transform_3, window_bounds = array<i64: 1, 1, 8, 128>}]} {
    %c0 = arith.constant 0 : index
    %c0_0 = arith.constant 0 : index
    %c0_1 = arith.constant 0 : index
    %0 = vector.load %arg2[%c0, %c0_0, %c0_1] : memref<1x4x256xf32, #tpu.memory_space<vmem>>, vector<1x4x256xf32>
    %1 = vector.shape_cast %0 : vector<1x4x256xf32> to vector<4x256xf32>
    %c0_2 = arith.constant 0 : index
    %c0_3 = arith.constant 0 : index
    %c0_4 = arith.constant 0 : index
    %2 = vector.load %arg3[%c0_2, %c0_3, %c0_4] : memref<1x1x256xi32, #tpu.memory_space<vmem>>, vector<1x1x256xi32>
    %3 = vector.shape_cast %2 : vector<1x1x256xi32> to vector<1x256xi32>
    %cst = arith.constant dense<0xFF800000> : vector<256xf32>
    %4 = vector.multi_reduction <maximumf>, %1, %cst [0] : vector<4x256xf32> to vector<256xf32>
    %5 = vector.shape_cast %4 : vector<256xf32> to vector<1x256xf32>
    %6 = vector.broadcast %5 : vector<1x256xf32> to vector<4x256xf32>
    %7 = arith.subf %1, %6 : vector<4x256xf32>
    %8 = math.exp %7 : vector<4x256xf32>
    %cst_5 = arith.constant dense<0.000000e+00> : vector<256xf32>
    %9 = vector.multi_reduction <add>, %8, %cst_5 [0] : vector<4x256xf32> to vector<256xf32>
    %10 = vector.shape_cast %9 : vector<256xf32> to vector<1x256xf32>
    %11 = math.log %10 : vector<1x256xf32>
    %12 = arith.addf %11, %5 : vector<1x256xf32>
    %13 = tpu.iota {dimensions = array<i32: 0>} : vector<4x256xi32>
    %14 = vector.broadcast %3 : vector<1x256xi32> to vector<4x256xi32>
    %15 = arith.cmpi eq, %13, %14 : vector<4x256xi32>
    %cst_6 = arith.constant 0.000000e+00 : f32
    %16 = vector.broadcast %cst_6 : f32 to vector<4x256xf32>
    %17 = arith.select %15, %1, %16 : vector<4x256xi1>, vector<4x256xf32>
    %cst_7 = arith.constant dense<0.000000e+00> : vector<256xf32>
    %18 = vector.multi_reduction <add>, %17, %cst_7 [0] : vector<4x256xf32> to vector<256xf32>
    %19 = vector.shape_cast %18 : vector<256xf32> to vector<1x256xf32>
    %c256_i32 = arith.constant 256 : i32
    %20 = arith.muli %arg1, %c256_i32 : i32
    %21 = tpu.iota {dimensions = array<i32: 1>} : vector<1x256xi32>
    %22 = vector.broadcast %20 : i32 to vector<1x256xi32>
    %23 = arith.addi %22, %21 : vector<1x256xi32>
    %c255_i32 = arith.constant 255 : i32
    %24 = vector.broadcast %c255_i32 : i32 to vector<1x256xi32>
    %25 = arith.cmpi ne, %3, %24 : vector<1x256xi32>
    %c256_i32_8 = arith.constant 256 : i32
    %26 = vector.broadcast %c256_i32_8 : i32 to vector<1x256xi32>
    %27 = arith.cmpi slt, %23, %26 : vector<1x256xi32>
    %28 = arith.andi %25, %27 : vector<1x256xi1>
    %29 = arith.subf %12, %19 : vector<1x256xf32>
    %cst_9 = arith.constant 0.000000e+00 : f32
    %30 = vector.broadcast %cst_9 : f32 to vector<1x256xf32>
    %31 = arith.select %28, %29, %30 : vector<1x256xi1>, vector<1x256xf32>
    %32 = vector.shape_cast %31 : vector<1x256xf32> to vector<1x1x256xf32>
    %cst_10 = arith.constant dense<0.000000e+00> : vector<1xf32>
    %33 = vector.multi_reduction <add>, %32, %cst_10 [1, 2] : vector<1x1x256xf32> to vector<1xf32>
    %34 = vector.shape_cast %33 : vector<1xf32> to vector<1x1x1xf32>
    %35 = vector.extract %34[0, 0, 0] : f32 from vector<1x1x1xf32>
    %36 = arith.extui %28 : vector<1x256xi1> to vector<1x256xi32>
    %37 = arith.sitofp %36 : vector<1x256xi32> to vector<1x256xf32>
    %38 = vector.shape_cast %37 : vector<1x256xf32> to vector<1x1x256xf32>
    %cst_11 = arith.constant dense<0.000000e+00> : vector<1xf32>
    %39 = vector.multi_reduction <add>, %38, %cst_11 [1, 2] : vector<1x1x256xf32> to vector<1xf32>
    %40 = vector.shape_cast %39 : vector<1xf32> to vector<1x1x1xf32>
    %41 = vector.extract %40[0, 0, 0] : f32 from vector<1x1x1xf32>
    %42 = tpu.iota {dimensions = array<i32: 2>} : vector<1x1x8x128xi32>
    %43 = tpu.iota {dimensions = array<i32: 3>} : vector<1x1x8x128xi32>
    %c0_i32 = arith.constant 0 : i32
    %44 = vector.broadcast %c0_i32 : i32 to vector<1x1x8x128xi32>
    %45 = arith.cmpi eq, %42, %44 : vector<1x1x8x128xi32>
    %c0_i32_12 = arith.constant 0 : i32
    %46 = vector.broadcast %c0_i32_12 : i32 to vector<1x1x8x128xi32>
    %47 = arith.cmpi eq, %43, %46 : vector<1x1x8x128xi32>
    %48 = arith.andi %45, %47 : vector<1x1x8x128xi1>
    %cst_13 = arith.constant 0.000000e+00 : f32
    %49 = vector.broadcast %35 : f32 to vector<1x1x8x128xf32>
    %50 = vector.broadcast %cst_13 : f32 to vector<1x1x8x128xf32>
    %51 = arith.select %48, %49, %50 : vector<1x1x8x128xi1>, vector<1x1x8x128xf32>
    %c0_14 = arith.constant 0 : index
    %c0_15 = arith.constant 0 : index
    %c0_16 = arith.constant 0 : index
    %c0_17 = arith.constant 0 : index
    %52 = vector.load %arg4[%c0_14, %c0_15, %c0_16, %c0_17] : memref<1x1x8x128xf32, #tpu.memory_space<vmem>>, vector<1x1x8x128xf32>
    tpu.vector_store %arg4[%c0_14, %c0_15, %c0_16, %c0_17], %51 {strides = array<i32>} : memref<1x1x8x128xf32, #tpu.memory_space<vmem>>, vector<1x1x8x128xf32>,
    %cst_18 = arith.constant 0.000000e+00 : f32
    %53 = vector.broadcast %41 : f32 to vector<1x1x8x128xf32>
    %54 = vector.broadcast %cst_18 : f32 to vector<1x1x8x128xf32>
    %55 = arith.select %48, %53, %54 : vector<1x1x8x128xi1>, vector<1x1x8x128xf32>
    %c0_19 = arith.constant 0 : index
    %c0_20 = arith.constant 0 : index
    %c0_21 = arith.constant 0 : index
    %c0_22 = arith.constant 0 : index
    %56 = vector.load %arg5[%c0_19, %c0_20, %c0_21, %c0_22] : memref<1x1x8x128xf32, #tpu.memory_space<vmem>>, vector<1x1x8x128xf32>
    tpu.vector_store %arg5[%c0_19, %c0_20, %c0_21, %c0_22], %55 {strides = array<i32>} : memref<1x1x8x128xf32, #tpu.memory_space<vmem>>, vector<1x1x8x128xf32>,
    return
  }
  func.func @transform_0(%arg0: i32, %arg1: i32) -> (i32, i32, i32) {
    %c0_i32 = arith.constant 0 : i32
    %c0_i32_0 = arith.constant 0 : i32
    return %arg0, %c0_i32, %arg1 : i32, i32, i32
  }
  func.func @transform_1(%arg0: i32, %arg1: i32) -> (i32, i32, i32) {
    %c0_i32 = arith.constant 0 : i32
    %c0_i32_0 = arith.constant 0 : i32
    return %arg0, %c0_i32, %arg1 : i32, i32, i32
  }
  func.func @transform_2(%arg0: i32, %arg1: i32) -> (i32, i32, i32, i32) {
    %c0_i32 = arith.constant 0 : i32
    %c0_i32_0 = arith.constant 0 : i32
    %c0_i32_1 = arith.constant 0 : i32
    return %arg0, %arg1, %c0_i32, %c0_i32_0 : i32, i32, i32, i32
  }
  func.func @transform_3(%arg0: i32, %arg1: i32) -> (i32, i32, i32, i32) {
    %c0_i32 = arith.constant 0 : i32
    %c0_i32_0 = arith.constant 0 : i32
    %c0_i32_1 = arith.constant 0 : i32
    return %arg0, %arg1, %c0_i32, %c0_i32_0 : i32, i32, i32, i32
  }
}

</mosaic_0001>

<bundles_post_ra>
// kernel: tpu_custom_call.1
= control target key start
LH: loop header
LB: loop body
LE: loop exit
PB: predicated region body
PF: predicated region fallthrough
CT: control target
= control target key end

     0   :  { %9 = vsyncpa [#allocation3], 0  ;;  %s1230_s0 = inlined_call_operand.hbm [shape: f32[2,4,256], index: 0, kind: input, shape index: {}]   ;;  %s1231_s1 = inlined_call_operand.hbm [shape: s32[2,1,256], index: 1, kind: input, shape index: {}]   ;;  %s1232_s2 = inlined_call_operand.hbm [shape: f32[2,1,8,128], index: 2, kind: output, shape index: {0}]   ;;  %s1233_s3 = inlined_call_operand.hbm [shape: f32[2,1,8,128], index: 3, kind: output, shape index: {1}]  }
   0x1   :  { %11 = vsyncpa [#allocation3 + $0x1], 0 }
   0x2   :  { %12 = vsyncpa [#allocation6], 0 }
   0x3   :  { %14 = vsyncpa [#allocation6 + $0x1], 0 }
   0x4   :  { %15 = vsyncpa [#allocation4], 0 }
   0x5   :  { %17 = vsyncpa [#allocation4 + $0x1], 0 }
   0x6   :  { %18 = vsyncpa [#allocation9], 0 }
   0x7   :  { %20 = vsyncpa [#allocation9 + $0x1], 0  ;;  %s940_s12 = smov 0   ;;  %s942_s13 = smov 0  }
   0x8   :  { %s944_s14 = smov 0   ;;  %s946_s15 = smov 0  }
   0x9   :  { %s948_s16 = smov 0   ;;  %s950_s17 = smov 0  }
   0xa LB: > { %s623_s18 = sadd.s32 4294967295, %s911_s17   ;;  %s624_s19 = sadd.s32 4294967294, %s911_s17   ;;  %s911_s17 = sphi %s950_s17, %s26_s17   ;;  %s907_s16 = sphi %s948_s16, %s1255_s16   ;;  %s903_s15 = sphi %s946_s15, %s1254_s15   ;;  %s899_s14 = sphi %s944_s14, %s1253_s14   ;;  %s895_s13 = sphi %s942_s13, %s1252_s13   ;;  %s891_s12 = sphi %s940_s12, %s1251_s12  }
   0xb   : > { %s38_s20 = sadd.s32 1, %s907_s16  ;;  %s47_s21 = sadd.s32 1, %s899_s14 }
   0xc   : > { %p40_p0 = scmp.ge.s32.totalorder %s38_s20, 2  ;;  %p54_p1 = scmp.ne.s32.totalorder %s899_s14, %s895_s13 }
   0xd   : > { %p55_p2 = scmp.eq.s32.totalorder %s911_s17, 0  ;;  %p60_p3 = scmp.ne.s32.totalorder %s895_s13, %s891_s12 }
   0xe   : > { %s1257_s20 = smov (%p40_p0, %s38_s20), 0  ;;  %p61_p5 = scmp.eq.s32.totalorder %s623_s18, 0 }
   0xf   : > { %p981_p4 = por %p55_p2, %p54_p1  ;;  %s42_s23 = ssub.s32 %s907_s16, %s1257_s20 }
  0x10   : > { %p114_p6 = scmp.eq.s32.totalorder %s623_s18, 1  ;;  %p45_p7 = scmp.eq.s32.totalorder %s42_s23, 0 }
  0x11   : > { %p987_p8 = por %p61_p5, %p60_p3  ;;  %p120_p10 = scmp.eq.s32.totalorder %s624_s19, 1 }
  0x12   : > { %p991_p9 = por %p114_p6, %p54_p1  ;;  %p673_p13 = scmp.lt.s32.totalorder %s911_s17, 2 }
  0x13   : > { %s1237_s24 = scalar_select %p987_p8, 1, 0 }
  0x14   : > { %s1238_s25 = scalar_select %p991_p9, 1, 0 }
  0x15   : > { %s996_s26 = scalar_select %p45_p7, %s899_s14, %s47_s21  }
  0x16   : > { %p998_p11 = por %p120_p10, %p60_p3  ;;  %s1005_s28 = sand.u32 1, %s899_s14  }
  0x17   : > { %s627_s29 = sshll.u32 %s1005_s28, 3  ;;  %s645_s30 = sshll.u32 %s907_s16, 7 }
  0x18   : > { %s1239_s27 = scalar_select %p998_p11, 1, 0 }
  0x19   : > { %s1012_s6 = scalar_lea.hbm %s1230_s0, %s645_s30  ;;  %s172_s7 = scalar_lea.vmem [#allocation2], %s627_s29 }
  0x1a   : > { %s182_s8 = sshll.u32 %s172_s7, 4  ;;  %p1018_p0 = pnand %p673_p13, %p981_p4  ;;  %s1014_s8 = int_to_ptr.vmem [resolvable:$true] %s182_s8 }
  0x1b   : > { %s169_s10 = scalar_lea.sflag [#allocation3], %s1005_s28  ;;  %s733_s11 = scalar_lea.hbm %s1012_s6, 128 }
  0x1c   : > { %p734_p3 = scmp.ne.s32.totalorder %s1012_s6, %s733_s11  ;;  %p735_p5 = pneg %p1018_p0 }
  0x1d   : > { %s738_s21 = scalar_lea.hbm %s1230_s0, 256  ;;  %p739_p4 = scmp.lt.u32.totalorder %s1012_s6, %s1230_s0 }
  0x1e   : > { %p736_p6 = pnand %p735_p5, %p734_p3  ;;  %p740_p10 = scmp.lt.u32.totalorder %s738_s21, %s733_s11 }
  0x1f   : > { %p742_p12 = scmp.lt.u32.totalorder %s733_s11, %s1012_s6 }
  0x20   : > { %p737_p7 = pneg %p736_p6  ;;  %p741_p13 = por %p740_p10, %p739_p4 }
  0x22   : > { %p743_p1 = por %p742_p12, %p741_p13 }
  0x24   : > { %p744_p2 = pnand %p743_p1, %p737_p7 }
  0x26   : > { %747 = shalt.err (!%p744_p2)
}
  0x27   : > { %s748_s29 = scalar_lea.vmem %s1014_s8, 128  ;;  %s913_s30 = smov [#allocation2]  }
  0x28   : > { %p749_p3 = scmp.ne.s32.totalorder %s1014_s8, %s748_s29  ;;  %s753_s4 = sshll.u32 %s913_s30, 4  ;;  %s754_s4 = int_to_ptr.vmem [resolvable:$false] %s753_s4 }
  0x29   : > { %s755_s5 = scalar_lea.vmem %s754_s4, 256  ;;  %p756_p9 = scmp.lt.s32.totalorder %s1014_s8, %s754_s4 }
  0x2a   : > { %p751_p6 = pnand %p749_p3, %p735_p5  ;;  %p757_p4 = scmp.lt.s32.totalorder %s755_s5, %s748_s29 }
  0x2c   : > { %p752_p11 = pneg %p751_p6  ;;  %p758_p10 = por %p757_p4, %p756_p9 }
  0x2e   : > { %p759_p12 = pnand %p758_p10, %p752_p11 }
  0x30   : > { %762 = shalt.err (!%p759_p12)
}
  0x31   : > { %662 = dma.hbm_to_vmem [thread:$0]  (!%p1018_p0), %s1012_s6, 128, %s1014_s8, %s169_s10  }
  0x32   : > { %p1241_p1 = scmp.lt.s32.totalorder %s911_s17, 3  ;;  %p1242_p2 = scmp.ge.s32.totalorder %s911_s17, 1 }
  0x33   : > { %s630_s11 = sshll.u32 %s1005_s28, 1  ;;  %s646_s18 = sshll.u32 %s907_s16, 5 }
  0x34   : > { %p1054_p7 = pnand %p1242_p2, %p1241_p1  ;;  %s1063_s22 = scalar_lea.hbm %s1231_s1, %s646_s18 }
  0x35   : > { %s193_s23 = scalar_lea.vmem [#allocation5], %s630_s11  ;;  %s190_s6 = scalar_lea.sflag [#allocation6], %s1005_s28 }
  0x36   : > { %s1243_s7 = scalar_select %p1054_p7, 1, 0 }
  0x37   : > { %s203_s29 = sshll.u32 %s193_s23, 4  ;;  %s763_s8 = scalar_lea.hbm %s1063_s22, 32  ;;  %s204_s29 = int_to_ptr.vmem [resolvable:$true] %s203_s29 }
  0x38   : > { %p764_p9 = scmp.ne.s32.totalorder %s1063_s22, %s763_s8  ;;  %s768_s4 = scalar_lea.hbm %s1231_s1, 64 }
  0x39   : > { %p769_p3 = scmp.lt.u32.totalorder %s1063_s22, %s1231_s1  ;;  %p770_p6 = scmp.lt.u32.totalorder %s768_s4, %s763_s8 }
  0x3a   : > { %p766_p11 = pnand %p764_p9, %p735_p5  ;;  %p772_p10 = scmp.lt.u32.totalorder %s763_s8, %s1063_s22 }
  0x3b   : > { %p771_p4 = por %p770_p6, %p769_p3 }
  0x3c   : > { %p767_p13 = pneg %p766_p11 }
  0x3d   : > { %p773_p12 = por %p772_p10, %p771_p4 }
  0x3f   : > { %p774_p1 = pnand %p773_p12, %p767_p13 }
  0x41   : > { %777 = shalt.err (!%p774_p1)
}
  0x42   : > { %s778_s28 = scalar_lea.vmem %s204_s29, 32  ;;  %s914_s11 = smov [#allocation5]  }
  0x43   : > { %p779_p2 = scmp.ne.s32.totalorder %s204_s29, %s778_s28  ;;  %s783_s19 = sshll.u32 %s914_s11, 4  ;;  %s784_s19 = int_to_ptr.vmem [resolvable:$false] %s783_s19 }
  0x44   : > { %s785_s21 = scalar_lea.vmem %s784_s19, 64  ;;  %p786_p8 = scmp.lt.s32.totalorder %s204_s29, %s784_s19 }
  0x45   : > { %p781_p9 = pnand %p779_p2, %p735_p5  ;;  %p787_p7 = scmp.lt.s32.totalorder %s785_s21, %s778_s28 }
  0x47   : > { %p782_p11 = pneg %p781_p9  ;;  %p788_p3 = por %p787_p7, %p786_p8 }
  0x49   : > { %p789_p6 = pnand %p788_p3, %p782_p11 }
  0x4b   : > { %792 = shalt.err (!%p789_p6)
}
  0x4c   : > { %665 = dma.hbm_to_vmem [thread:$0]  (!%p1018_p0), %s1063_s22, 32, %s204_s29, %s190_s6  }
  0x4d   : > { %p1244_p13 = scmp.ne.s32.totalorder %s1243_s7, 0 }
  0x4e   : > { %s1088_s23 = sand.u32 (!%p1244_p13), 1, %s895_s13   ;;  %p1245_p8 = scmp.ne.s32.totalorder (!%p1244_p13), %s1237_s24, 0 }
  0x4f   : > { %212 = sbr.rel (%p1244_p13) target bundleno = 416 (0x1a0), region = 28  ;;  %s1091_s8 = sshll.u32 (!%p1244_p13), %s1088_s23, 3 }
  0x50   : > { %s215_s10 = scalar_lea.sflag (!%p1244_p13), [#allocation3], %s1088_s23  ;;  %s218_s30 = scalar_lea.vmem (!%p1244_p13), [#allocation2], %s1091_s8 }
  0x56   : > { %874 = dma.done.wait (%p1245_p8), %s215_s10, 128  }
  0x57   : > { %876 = vsyncadd (%p1245_p8), %s215_s10, 4294967168  ;;  %s635_s9 = sshll.u32 %s1088_s23, 1  ;;  %s224_s7 = scalar_lea.sflag [#allocation6], %s1088_s23 }
  0x58   : > { %s227_s22 = scalar_lea.vmem [#allocation5], %s635_s9 }
  0x59   : > { %878 = dma.done.wait (%p1245_p8), %s224_s7, 32  }
  0x5a   : > { %880 = vsyncadd (%p1245_p8), %s224_s7, 4294967264  ;;  %vm267_vm0 = vcmask 1043456   ;;  %v262_v0 = vld [vmem:[%s218_s30] sm:$0xff]  ;;  %v312_v15 = vlaneseq  ;;  %v263_v22 = vld [vmem:[%s227_s22] sm:$0x3]  ;;  %v916_v57 = vmov 1  }
  0x5b   : > { %v265_v1 = vcombine.high %v262_v0, %v262_v0  ;;  %v268_v2 = vsel %vm267_vm0, %v262_v0, -inf  ;;  %v915_v47 = vmov 1966171168   ;;  %v352_v58 = vcombine.low %v916_v57, %v916_v57  ;;  %s641_s24 = sshll.u32 %s903_s15, 7  ;;  %s252_s29 = scalar_lea.vmem [#allocation7], %s1091_s8 }
  0x5c   : > { %v269_v3 = vrot.slane %v268_v2, 4  ;;  %v1108_v18 = vshrl.u32 %v312_v15, 7  ;;  %v354_v48 = vunpack.c.l.s4 %v915_v47  ;;  %vm347_vm3 = vcmp.ne.s32.totalorder %v263_v22, 255  ;;  %s468_s6 = sshll.u32 %s252_s29, 4  ;;  %s259_s5 = scalar_lea.vmem [#allocation8], %s1091_s8  ;;  %s1147_s6 = int_to_ptr.vmem [resolvable:$true] %s468_s6 }
  0x5d   : > { %v275_v4 = vsel %vm267_vm0, %v265_v1, -inf  ;;  %vm401_vm6 = vcmask 1040384   ;;  %s482_s18 = sshll.u32 %s259_s5, 4  ;;  %s1145_s19 = scalar_lea.hbm %s1232_s2, %s641_s24  ;;  %s1156_s18 = int_to_ptr.vmem [resolvable:$true] %s482_s18 }
  0x5e   : > { %v270_v5 = vmax.f32 %v268_v2, %v269_v3  ;;  %v276_v6 = vrot.slane %v275_v4, 4  ;;  %v1111_v21 = vsub.s32 0, %v1108_v18  ;;  %v1114_v23 = vsub.s32 1, %v1108_v18  ;;  %s1152_s10 = scalar_lea.hbm %s1233_s3, %s641_s24  ;;  %s449_s9 = scalar_lea.sflag [#allocation4], %s1088_s23 }
  0x5f   : > { %v355_v54 = vunpack.c.0.s8 %v354_v48  ;;  %vm439_vm7 = vcmp.eq.s32.totalorder %v1108_v18, 0  ;;  %s793_s7 = scalar_lea.vmem %s1147_s6, 128  ;;  %p1248_p5 = scmp.ne.s32.totalorder %s1238_s25, 0 }
  0x60   : > { %v271_v7 = vrot.slane %v270_v5, 2  ;;  %v277_v8 = vmax.f32 %v275_v4, %v276_v6  ;;  %v317_v24 = vrot.slane %v263_v22, %v1111_v21  ;;  %v321_v25 = vrot.slane %v263_v22, %v1114_v23  ;;  %p794_p0 = scmp.ne.s32.totalorder %s1147_s6, %s793_s7  ;;  %s918_s22 = smov [#allocation7]  }
  0x61   : > { %v358_v59 = vsub.s32 %v355_v54, %v1108_v18 }
  0x62   : > { %v272_v9 = vmax.f32 %v270_v5, %v271_v7  ;;  %v278_v10 = vrot.slane %v277_v8, 2  ;;  %vm322_vm1 = vcmp.eq.s32.totalorder %v1108_v18, %v317_v24  ;;  %vm323_vm2 = vcmp.eq.s32.totalorder %v1108_v18, %v321_v25  ;;  %p795_p7 = pnand %p794_p0, %p1248_p5 }
  0x63   : > { %v324_v26 = vsel %vm322_vm1, %v262_v0, 0.0  ;;  %v325_v30 = vsel %vm323_vm2, %v265_v1, 0.0  ;;  %v359_v62 = vrot.slane %v352_v58, %v358_v59 }
  0x64   : > { %v273_v11 = vrot.slane %v272_v9, 1  ;;  %v279_v12 = vmax.f32 %v277_v8, %v278_v10  ;;  %v326_v32 = vsel %vm267_vm0, %v324_v26, 0.0  ;;  %v333_v36 = vsel %vm267_vm0, %v325_v30, 0.0  ;;  %p796_p4 = pneg %p795_p7 }
  0x65   : > { %v327_v37 = vrot.slane %v326_v32, 4  ;;  %v334_v40 = vrot.slane %v333_v36, 4  ;;  %v366_v6 = vrot.slane %v359_v62, %v358_v59 }
  0x66   : > { %v274_v13 = vmax.f32 %v272_v9, %v273_v11  ;;  %v280_v14 = vrot.slane %v279_v12, 1 }
  0x67   : > { %v328_v43 = vadd.f32 %v327_v37, %v326_v32  ;;  %v335_v46 = vadd.f32 %v334_v40, %v333_v36  ;;  %vm367_vm4 = vcmp.ne.s32.totalorder %v366_v6, 0 }
  0x68   : > { %v281_v16 = vmax.f32 %v279_v12, %v280_v14  ;;  %vm368_vm5 = vmand %vm347_vm3, %vm367_vm4  ;;  %v917_v12 = vmov 0.0  }
  0x69   : > { %v329_v51 = vrot.slane %v328_v43, 2  ;;  %v336_v53 = vrot.slane %v335_v46, 2  ;;  %v638_v14 = vsel %vm368_vm5, 1.0, %v917_v12 }
  0x6a   : > { %v284_v17 = vcombine.low %v274_v13, %v281_v16 }
  0x6b   : > { %v330_v55 = vadd.f32 %v329_v51, %v328_v43  ;;  %v337_v56 = vadd.f32 %v336_v53, %v335_v46 }
  0x6c   : > { %v286_v19 = vsub.f32 %v262_v0, %v284_v17 }
  0x6d   : > { %v331_v60 = vrot.slane %v330_v55, 1  ;;  %v338_v61 = vrot.slane %v337_v56, 1 }
  0x6e   : > { %v287_v20 = vmul.f32 1.442695, %v286_v19  ;;  %v420_v19 = vrot.slane %v638_v14, %v1111_v21 }
  0x6f   : > { %v332_v1 = vadd.f32 %v331_v60, %v330_v55  ;;  %v339_v5 = vadd.f32 %v338_v61, %v337_v56 }
  0x70   : > { %727 = vpow2.f32 %v287_v20  ;;  %v424_v20 = vrot.slane %v638_v14, %v1114_v23  ;;  %v427_v26 = vsel %vm401_vm6, %v420_v19, 0.0 }
  0x7a   : > { %v728_v27 = vpop.eup %727 }
  0x7b   : > { %v290_v28 = vcombine.high %v728_v27, %v728_v27  ;;  %v292_v29 = vsel %vm267_vm0, %v728_v27, 0.0  ;;  %v428_v27 = vsel %vm401_vm6, %v424_v20, 0.0 }
  0x7c   : > { %v293_v31 = vrot.slane %v292_v29, 4 }
  0x7d   : > { %v299_v33 = vsel %vm267_vm0, %v290_v28, 0.0 }
  0x7e   : > { %v294_v34 = vadd.f32 %v293_v31, %v292_v29  ;;  %v300_v35 = vrot.slane %v299_v33, 4  ;;  %v429_v29 = vadd.f32 %v428_v27, %v427_v26 }
  0x80   : > { %v295_v38 = vrot.slane %v294_v34, 2  ;;  %v301_v39 = vadd.f32 %v300_v35, %v299_v33 }
  0x82   : > { %v296_v41 = vadd.f32 %v295_v38, %v294_v34  ;;  %v302_v42 = vrot.slane %v301_v39, 2 }
  0x84   : > { %v297_v44 = vrot.slane %v296_v41, 1  ;;  %v303_v45 = vadd.f32 %v302_v42, %v301_v39  ;;  %v342_v42 = vand.u32 127, %v312_v15 }
  0x86   : > { %v298_v49 = vadd.f32 %v297_v44, %v296_v41  ;;  %v304_v50 = vrot.slane %v303_v45, 1  ;;  %vm440_vm8 = vcmp.eq.s32.totalorder %v342_v42, 0 }
  0x87   : > { %vm1131_vm9 = vmand %vm439_vm7, %vm440_vm8 }
  0x88   : > { %v305_v52 = vadd.f32 %v304_v50, %v303_v45  ;;  %729 = vlog2.f32 %v298_v49 }
  0x8a   : > { %731 = vlog2.f32 %v305_v52 }
  0x92   : > { %v730_v63 = vpop.eup %729 }
  0x93   : > { %v307_v0 = vmul.f32 0.6931472, %v730_v63 }
  0x94   : > { %v732_v2 = vpop.eup %731 }
  0x95   : > { %v309_v3 = vmul.f32 0.6931472, %v732_v2  ;;  %v310_v4 = vadd.f32 %v307_v0, %v274_v13 }
  0x97   : > { %v311_v7 = vadd.f32 %v309_v3, %v281_v16  ;;  %v369_v8 = vsub.f32 %v310_v4, %v332_v1 }
  0x99   : > { %v370_v9 = vsub.f32 %v311_v7, %v339_v5 }
  0x9b   : > { %v373_v10 = vcombine.low %v369_v8, %v370_v9 }
  0x9d   : > { %v380_v11 = vrot.slane %v373_v10, %v358_v59 }
  0x9f   : > { %v387_v17 = vrot.slane %v380_v11, %v358_v59 }
  0xa1   : > { %v389_v24 = vsel %vm368_vm5, %v387_v17, 0.0 }
  0xa2   : > { %v394_v13 = vrot.slane %v389_v24, %v1111_v21  ;;  %v398_v16 = vrot.slane %v389_v24, %v1114_v23 }
  0xa4   : > { %v402_v25 = vsel %vm401_vm6, %v394_v13, 0.0  ;;  %v403_v22 = vsel %vm401_vm6, %v398_v16, 0.0 }
  0xa5   : > { %v404_v28 = vadd.f32 %v403_v22, %v402_v25 }
  0xa7   : > { %405 = vadd.xlane.f32.xlu0 %v404_v28 }
  0xab   : > { %430 = vadd.xlane.f32.xlu0 %v429_v29 }
 0x134   : > { %v406_v30 = vpop.xlane.xlu0 %405 }
 0x135   : > { %v407_v31 = vrot.slane %v406_v30, 4 }
 0x137   : > { %v408_v32 = vadd.f32 %v407_v31, %v406_v30 }
 0x138   : > { %v431_v33 = vpop.xlane.xlu0 %430 }
 0x139   : > { %v409_v34 = vrot.slane %v408_v32, 2  ;;  %v432_v35 = vrot.slane %v431_v33, 4 }
 0x13b   : > { %v433_v36 = vadd.f32 %v432_v35, %v431_v33  ;;  %v410_v21 = vadd.f32 %v409_v34, %v408_v32 }
 0x13d   : > { %v434_v37 = vrot.slane %v433_v36, 2  ;;  %v411_v23 = vrot.slane %v410_v21, 1 }
 0x13f   : > { %v435_v38 = vadd.f32 %v434_v37, %v433_v36  ;;  %v412_v39 = vadd.f32 %v411_v23, %v410_v21 }
 0x141   : > { %647 = vpush %v412_v39  ;;  %v436_v40 = vrot.slane %v435_v38, 1 }
 0x143   : > { %v437_v41 = vadd.f32 %v436_v40, %v435_v38 }
 0x145   : > { %649 = vpush %v437_v41 }
 0x172   : > { %s648_s4 = spop %647 }
 0x173   : > { %v442_v44 = vstv %s648_s4  ;;  %s797_s4 = sshll.u32 %s918_s22, 4  ;;  %s798_s4 = int_to_ptr.vmem [resolvable:$false] %s797_s4 }
 0x174   : > { %v443_v15 = vsel %vm1131_vm9, %v442_v44, 0.0  ;;  %p800_p10 = scmp.lt.s32.totalorder %s1147_s6, %s798_s4 }
 0x175   : > { %444 = vst [vmem:[%s252_s29] sm:$0xff] %v443_v15  ;;  %s799_s29 = scalar_lea.vmem %s798_s4, 256 }
 0x176   : > { %s1154_s30 = spop %649  ;;  %p801_p12 = scmp.lt.s32.totalorder %s799_s29, %s793_s7 }
 0x177   : > { %v445_v18 = vstv %s1154_s30 }
 0x178   : > { %p802_p1 = por %p801_p12, %p800_p10 }
 0x17a   : > { %p803_p2 = pnand %p802_p1, %p796_p4 }
 0x17c   : > { %806 = shalt.err (!%p803_p2)
}
 0x17d   : > { %s807_s24 = scalar_lea.hbm %s1145_s19, 128  ;;  %s811_s15 = scalar_lea.hbm %s1232_s2, 256 }
 0x17e   : > { %p808_p9 = scmp.ne.s32.totalorder %s1145_s19, %s807_s24  ;;  %p812_p6 = scmp.lt.u32.totalorder %s1145_s19, %s1232_s2 }
 0x17f   : > { %p813_p13 = scmp.lt.u32.totalorder %s811_s15, %s807_s24  ;;  %p815_p0 = scmp.lt.u32.totalorder %s807_s24, %s1145_s19 }
 0x180   : > { %p809_p11 = pnand %p808_p9, %p1248_p5 }
 0x181   : > { %p814_p8 = por %p813_p13, %p812_p6 }
 0x182   : > { %p810_p3 = pneg %p809_p11 }
 0x183   : > { %p816_p7 = por %p815_p0, %p814_p8 }
 0x185   : > { %p817_p4 = pnand %p816_p7, %p810_p3 }
 0x187   : > { %820 = shalt.err (!%p817_p4)
}
 0x188   : > { %655 = dma.vmem_to_hbm [thread:$0]  (%p1248_p5), %s1147_s6, 128, %s1145_s19, %s449_s9   ;;  %v446_v45 = vsel %vm1131_vm9, %v445_v18, 0.0 }
 0x189   : > { %447 = vst [vmem:[%s259_s5] sm:$0xff] %v446_v45  ;;  %s454_s7 = scalar_lea.sflag [#allocation9], %s1088_s23  ;;  %s821_s22 = scalar_lea.vmem %s1156_s18, 128 }
 0x18a   : > { %p822_p10 = scmp.ne.s32.totalorder %s1156_s18, %s821_s22  ;;  %s919_s4 = smov [#allocation8]  }
 0x18b   : > { %s825_s29 = sshll.u32 %s919_s4, 4  ;;  %s826_s29 = int_to_ptr.vmem [resolvable:$false] %s825_s29 }
 0x18c   : > { %p823_p12 = pnand %p822_p10, %p1248_p5  ;;  %s827_s24 = scalar_lea.vmem %s826_s29, 256 }
 0x18d   : > { %p828_p2 = scmp.lt.s32.totalorder %s1156_s18, %s826_s29  ;;  %p829_p9 = scmp.lt.s32.totalorder %s827_s24, %s821_s22 }
 0x18e   : > { %p824_p1 = pneg %p823_p12 }
 0x18f   : > { %p830_p11 = por %p829_p9, %p828_p2 }
 0x191   : > { %p831_p3 = pnand %p830_p11, %p824_p1 }
 0x193   : > { %834 = shalt.err (!%p831_p3)
}
 0x194   : > { %s835_s23 = scalar_lea.hbm %s1152_s10, 128  ;;  %s839_s5 = scalar_lea.hbm %s1233_s3, 256 }
 0x195   : > { %p836_p6 = scmp.ne.s32.totalorder %s1152_s10, %s835_s23  ;;  %p840_p0 = scmp.lt.u32.totalorder %s1152_s10, %s1233_s3 }
 0x196   : > { %p841_p7 = scmp.lt.u32.totalorder %s839_s5, %s835_s23  ;;  %p843_p10 = scmp.lt.u32.totalorder %s835_s23, %s1152_s10 }
 0x197   : > { %p837_p13 = pnand %p836_p6, %p1248_p5 }
 0x198   : > { %p842_p4 = por %p841_p7, %p840_p0 }
 0x199   : > { %p838_p8 = pneg %p837_p13 }
 0x19a   : > { %p844_p12 = por %p843_p10, %p842_p4 }
 0x19c   : > { %p845_p1 = pnand %p844_p12, %p838_p8 }
 0x19e   : > { %848 = shalt.err (!%p845_p1)
}
 0x19f   : > { %656 = dma.vmem_to_hbm [thread:$0]  (%p1248_p5), %s1156_s18, 128, %s1152_s10, %s454_s7  }
 0x1a0 PF: > { %s494_s28 = sand.u32 1, %s891_s12   ;;  %p1249_p2 = scmp.ne.s32.totalorder %s1239_s27, 0 }
 0x1a1   : > { %p1250_p9 = scmp.ge.s32.totalorder %s911_s17, 2  ;;  %s495_s11 = scalar_lea.sflag [#allocation4], %s494_s28 }
 0x1a3   : > { %p667_p11 = pnand %p1250_p9, %p1249_p2 }
 0x1a5   : > { %882 = dma.done.wait (!%p667_p11), %s495_s11, 128  }
 0x1a6   : > { %884 = vsyncadd (!%p667_p11), %s495_s11, 4294967168  ;;  %s504_s15 = scalar_lea.sflag [#allocation9], %s494_s28 }
 0x1a7   : > { %886 = dma.done.wait (!%p667_p11), %s504_s15, 128  }
 0x1a8   : > { %888 = vsyncadd (!%p667_p11), %s504_s15, 4294967168  ;;  %s26_s17 = sadd.s32 1, %s911_s17   ;;  %s1251_s12 = smov %s895_s13 }
 0x1a9   : > { %p23_p3 = scmp.ge.s32.totalorder %s26_s17, 4   ;;  %s1252_s13 = smov %s899_s14 }
 0x1aa   : > { %s1253_s14 = smov %s996_s26  ;;  %s1254_s15 = smov %s907_s16 }
 0x1ab   : > { %s1255_s16 = smov %s1257_s20  ;;  %25 = sbr.rel (!%p23_p3) target bundleno = 10 (0xa), region = 103 }
 0x1b2   :  { %509 = vsyncpa [#allocation3], 1 }
 0x1b3   :  { %511 = vsyncpa [#allocation3 + $0x1], 1 }
 0x1b4   :  { %512 = vsyncpa [#allocation6], 1 }
 0x1b5   :  { %514 = vsyncpa [#allocation6 + $0x1], 1 }
 0x1b6   :  { %515 = vsyncpa [#allocation4], 1 }
 0x1b7   :  { %517 = vsyncpa [#allocation4 + $0x1], 1 }
 0x1b8   :  { %518 = vsyncpa [#allocation9], 1 }
 0x1b9   :  { %520 = vsyncpa [#allocation9 + $0x1], 1 }

</bundles_post_ra>
